<compile_context>
chip_gen: v6e
topology: v6e:2x2x1
jax: 0.10.0
libtpu: 0.0.40
codegen_flags: <defaults>
</compile_context>

<pallas_src>
import math

import jax
import jax.numpy as jnp
from jax import lax
from jax.experimental import pallas as pl
from jax.experimental.pallas import tpu as pltpu

INPUT_SIZE = 4      # iris features
HIDDEN_SIZE = 16
NUM_CLASSES = 3     # fc2 params exist in the module but are unused in forward()


def mlp_fwd_kernel(x_ref, w1_ref, b1_ref, o_ref):
    # x: (Bt, F), w1: (H, F) PyTorch layout, b1: (1, H)
    # Contract the F axis of both operands -> no materialized transpose.
    h = lax.dot_general(
        x_ref[...], w1_ref[...],
        dimension_numbers=(((1,), (1,)), ((), ())),
        preferred_element_type=jnp.float32,
    )                                                  # (Bt, H) on the MXU
    o_ref[...] = jnp.maximum(h + b1_ref[...], 0.0)     # bias + ReLU on the VPU


def mlp_forward(x, w1, b1, *, block_m=512):
    """relu(x @ w1.T + b1) via Pallas. x:(B,F), w1:(H,F), b1:(1,H)."""
    B = x.shape[0]

    if B <= block_m:
        # Toy / small-batch path: whole problem is one VMEM block.  A grid,
        # scratch, or pipelining at this size only adds per-step overhead.
        return pl.pallas_call(
            mlp_fwd_kernel,
            out_shape=jax.ShapeDtypeStruct((B, HIDDEN_SIZE), jnp.float32),
            in_specs=[
                pl.BlockSpec(memory_space=pltpu.MemorySpace.VMEM),
                pl.BlockSpec(memory_space=pltpu.MemorySpace.VMEM),
                pl.BlockSpec(memory_space=pltpu.MemorySpace.VMEM),
            ],
            out_specs=pl.BlockSpec(memory_space=pltpu.MemorySpace.VMEM),
        )(x, w1, b1)

    # Large-batch path: tile the batch, keep the tiny weights resident.
    n_blocks = pl.cdiv(B, block_m)
    B_pad = n_blocks * block_m
    x_pad = jnp.pad(x, ((0, B_pad - B), (0, 0))) if B_pad != B else x

    out = pl.pallas_call(
        mlp_fwd_kernel,
        out_shape=jax.ShapeDtypeStruct((B_pad, HIDDEN_SIZE), jnp.float32),
        grid_spec=pltpu.PrefetchScalarGridSpec(
            num_scalar_prefetch=0,
            grid=(n_blocks,),
            in_specs=[
                pl.BlockSpec((block_m, INPUT_SIZE), lambda i: (i, 0)),
                # W1 / b1: full-array blocks, same block every step -> resident.
                pl.BlockSpec((HIDDEN_SIZE, INPUT_SIZE), lambda i: (0, 0)),
                pl.BlockSpec((1, HIDDEN_SIZE), lambda i: (0, 0)),
            ],
            out_specs=pl.BlockSpec((block_m, HIDDEN_SIZE), lambda i: (i, 0)),
        ),
        compiler_params=pltpu.CompilerParams(
            # Batch tiles are independent -> let v7x's two TCs split the grid.
            dimension_semantics=("parallel",),
        ),
    )(x_pad, w1, b1)
    return out[:B]


def init_params(key):
    # Deterministic init mimicking nn.Linear default: U(-1/sqrt(fan_in), +).
    k1, k2, k3, k4 = jax.random.split(key, 4)
    bound1 = 1.0 / math.sqrt(INPUT_SIZE)
    w1 = jax.random.uniform(k1, (HIDDEN_SIZE, INPUT_SIZE), jnp.float32,
                            -bound1, bound1)
    b1 = jax.random.uniform(k2, (1, HIDDEN_SIZE), jnp.float32,
                            -bound1, bound1)
    # fc2 params initialized for shape-fidelity but unused in forward().
    bound2 = 1.0 / math.sqrt(HIDDEN_SIZE)
    w2 = jax.random.uniform(k3, (NUM_CLASSES, HIDDEN_SIZE), jnp.float32,
                            -bound2, bound2)
    b2 = jax.random.uniform(k4, (NUM_CLASSES,), jnp.float32,
                            -bound2, bound2)
    return w1, b1, w2, b2


if __name__ == "__main__":
    key = jax.random.PRNGKey(0)
    k_x, k_xl, k_p = jax.random.split(key, 3)

    w1, b1, w2, b2 = init_params(k_p)   # w2/b2 unused by forward()

    # 1) Iris-scale path (single block, no grid).
    batch = 8
    x = jax.random.normal(k_x, (batch, INPUT_SIZE), jnp.float32)
    out = jax.block_until_ready(mlp_forward(x, w1, b1))
    ref = jnp.maximum(x @ w1.T + b1, 0.0)
    assert out.shape == (batch, HIDDEN_SIZE)
    assert jnp.allclose(out, ref, atol=1e-5), "small-batch mismatch vs reference"

    # 2) Exercise the tiled (gridded, pipelined) path as well.
    big_batch = 1024
    x_big = jax.random.normal(k_xl, (big_batch, INPUT_SIZE), jnp.float32)
    out_big = jax.block_until_ready(mlp_forward(x_big, w1, b1, block_m=512))
    ref_big = jnp.maximum(x_big @ w1.T + b1, 0.0)
    assert out_big.shape == (big_batch, HIDDEN_SIZE)
    assert jnp.allclose(out_big, ref_big, atol=1e-5), "tiled-path mismatch vs reference"

    print("KERNEL_OK")
</pallas_src>

<mosaic_0001>
module attributes {stable_mosaic.version = 11 : i64} {
  func.func @mlp_fwd_kernel(%arg0: memref<8x4xf32, #tpu.memory_space<vmem>>, %arg1: memref<16x4xf32, #tpu.memory_space<vmem>>, %arg2: memref<1x16xf32, #tpu.memory_space<vmem>>, %arg3: memref<8x16xf32, #tpu.memory_space<vmem>>) attributes {dimension_semantics = [], scalar_prefetch = 0 : i64, scratch_operands = 0 : i64, tpu.core_type = #tpu.core_type<tc>} {
    %c0 = arith.constant 0 : index
    %c0_0 = arith.constant 0 : index
    %0 = vector.load %arg0[%c0, %c0_0] : memref<8x4xf32, #tpu.memory_space<vmem>>, vector<8x4xf32>
    %c0_1 = arith.constant 0 : index
    %c0_2 = arith.constant 0 : index
    %1 = vector.load %arg1[%c0_1, %c0_2] : memref<16x4xf32, #tpu.memory_space<vmem>>, vector<16x4xf32>
    %cst = arith.constant dense<0.000000e+00> : vector<8x16xf32>
    %2 = tpu.matmul %0, %1, %cst {dimension_numbers = #tpu.dot_dimension_numbers<[1], [1], [0], [0], [0, 0, 1, 0], [], []>} : vector<8x4xf32>, vector<16x4xf32>, vector<8x16xf32> -> vector<8x16xf32>
    %c0_3 = arith.constant 0 : index
    %c0_4 = arith.constant 0 : index
    %3 = vector.load %arg2[%c0_3, %c0_4] : memref<1x16xf32, #tpu.memory_space<vmem>>, vector<1x16xf32>
    %4 = vector.broadcast %3 : vector<1x16xf32> to vector<8x16xf32>
    %5 = arith.addf %2, %4 : vector<8x16xf32>
    %cst_5 = arith.constant 0.000000e+00 : f32
    %6 = vector.broadcast %cst_5 : f32 to vector<8x16xf32>
    %7 = arith.maximumf %5, %6 : vector<8x16xf32>
    %c0_6 = arith.constant 0 : index
    %c0_7 = arith.constant 0 : index
    %8 = vector.load %arg3[%c0_6, %c0_7] : memref<8x16xf32, #tpu.memory_space<vmem>>, vector<8x16xf32>
    tpu.vector_store %arg3[%c0_6, %c0_7], %7 {strides = array<i32>} : memref<8x16xf32, #tpu.memory_space<vmem>>, vector<8x16xf32>,
    return
  }
}

</mosaic_0001>

<bundles_post_ra>
// kernel: tpu_custom_call.1
= control target key start
LH: loop header
LB: loop body
LE: loop exit
PB: predicated region body
PF: predicated region fallthrough
CT: control target
= control target key end

     0   :  { %vm25_vm0 = vcmask 31744   ;;  %v161_v1 = vmov 0.0   ;;  %vm162_vm1 = vmmov 0   ;;  %s199_s0 = inlined_call_operand.vmem [shape: f32[8,4], index: 0, kind: input, shape index: {}]   ;;  %s200_s1 = inlined_call_operand.vmem [shape: f32[16,4], index: 1, kind: input, shape index: {}]   ;;  %s201_s2 = inlined_call_operand.vmem [shape: f32[1,16], index: 2, kind: input, shape index: {}]   ;;  %s202_s3 = inlined_call_operand.hbm [shape: f32[8,16], index: 3, kind: output, shape index: {}]  }
   0x1   :  { %v17_v0 = vld [vmem:[%s200_s1 + $0x8] sm:$0xff]  ;;  %129 = vmatprep.subr.mxu0 %v161_v1  ;;  %133 = vmatprep.mubr.msk.f32.mxu0 %vm162_vm1, %v161_v1 }
   0x2   :  { %8 = vsyncpa [#allocation3], 0  ;;  %130 = vmatpush3.xpose.msk.msra.mxu0 %vm25_vm0, %v17_v0  ;;  %v16_v2 = vld [vmem:[%s200_s1] sm:$0xff]  ;;  %s163_s20 = smov [#allocation2]   ;;  %vm106_vm2 = vcmask 130048  }
   0x3   :  { %131 = vmatprep.subr.mxu0 %v161_v1  ;;  %v15_v3 = vld [vmem:[%s199_s0] sm:$0xff]  ;;  %s114_s21 = sshll.u32 %s163_s20, 4  ;;  %s115_s21 = int_to_ptr.vmem [resolvable:$true] %s114_s21 }
   0x4   :  { %v122_v4 = vld [vmem:[%s201_s2] ss:$0 sm:$0xff]  ;;  %s139_s1 = scalar_lea.vmem %s115_s21, 128  ;;  %p144_p1 = scmp.lt.s32.totalorder %s115_s21, %s115_s21 }
   0x5   :  { %p140_p0 = scmp.ne.s32.totalorder %s115_s21, %s139_s1  ;;  %p145_p2 = scmp.lt.s32.totalorder %s139_s1, %s139_s1 }
   0x6   :  { %132 = vmatpush3.xpose.msk.msra.mxu0 %vm25_vm0, %v16_v2 }
   0x7   :  { %p146_p3 = por %p145_p2, %p144_p1 }
   0x9   :  { %134 = vmatmul.mubr.msk.f32.vlgmr.msra.gmra.mxu0 %vm25_vm0, %v15_v3  ;;  %p147_p4 = pnand %p146_p3, %p140_p0 }
  0xc9   :  { %v101_v5 = vpop.f32.mrf.mxu0 }
  0xca   :  { %v102_v6 = vadd.f32 %v122_v4, %v101_v5 }
  0xcb   :  { %v135_v7 = vpop.f32.mrf.mxu0 }
  0xcc   :  { %v105_v8 = vmax.f32 %v102_v6, 0.0 }
  0xce   :  { %107 = vst.msk [vmem:[#allocation2] sm:$0xff] %vm106_vm2, %v105_v8 }
  0xcf   :  { %150 = shalt.err (!%p147_p4)
}
  0xd0   :  { %117 = dma.vmem_to_hbm [thread:$0]  %s115_s21, 128, %s202_s3, [#allocation3]  }
  0xd1   :  { %159 = dma.done.wait [#allocation3], 128  }
  0xd2   :  { %160 = vsyncadd [#allocation3], 4294967168 }
  0xd3   :  { %121 = vsyncpa [#allocation3], 1 }

</bundles_post_ra>
